<compile_context>
chip_gen: v5e
topology: v5e:2x2
jax: 0.10.0
libtpu: 0.0.40
codegen_flags: <defaults>
</compile_context>

<pallas_src>
import jax
import jax.numpy as jnp
from jax.experimental import pallas as pl
from jax.experimental.pallas import tpu as pltpu

_LANES = 128


def _lamboseen_kernel(params_ref, coords_ref, out_ref):
    """coords_ref: (TM, 128) f32 with lanes interleaved [x0 y0 x1 y1 ...]."""
    x0 = params_ref[0]
    y0 = params_ref[1]
    inv_scale = params_ref[2]          # exp(-logscale), hoisted to the wrapper
    circ = params_ref[3]

    lanes = coords_ref.shape[-1]

    # Per-lane-parity constants at shape (1, lanes); broadcasting across
    # sublanes is a cheap vreg sublane-broadcast, so these stay hoisted.
    lane = jax.lax.broadcasted_iota(jnp.int32, (1, lanes), 1)
    is_x = (lane & 1) == 0                          # even lane -> x coordinate
    center = jnp.where(is_x, x0, y0)
    signed_circ = jnp.where(is_x, -circ, circ)      # x-component carries the minus

    v = (coords_ref[...] - center) * inv_scale      # centered, scaled coords

    # Partner coordinate of each lane (y for an x-lane, x for a y-lane).
    # pltpu.roll follows jnp.roll semantics: roll(v, s)[..., i] = v[..., (i-s) % L],
    # so shift=L-1 fetches lane i+1 and shift=1 fetches lane i-1 (XLU slot).
    nxt = pltpu.roll(v, lanes - 1, axis=1)          # nxt[i] = v[i+1]
    prv = pltpu.roll(v, 1, axis=1)                  # prv[i] = v[i-1]
    partner = jnp.where(is_x, nxt, prv)

    r2 = v * v + partner * partner                  # |p - p0|^2 / scale^2

    # EUP reciprocal estimate + one Newton refinement (back to ~f32 accuracy).
    inv_r2 = pl.reciprocal(r2, approx=True)
    inv_r2 = inv_r2 * (2.0 - r2 * inv_r2)

    f = (1.0 - jnp.exp(-r2)) * inv_r2               # (1 - exp(-r^2)) / r^2
    out_ref[...] = signed_circ * f * partner        # (-f*y, f*x) * circulation


def _round_up(a, b):
    return (a + b - 1) // b * b


def lamboseen_forward(x, x0, y0, logscale, circulation, *,
                      block_rows=2048, target_steps=8):
    """x: [N, 2] float -> [N, 2] float32 (Lamb-Oseen vortex velocity)."""
    n = x.shape[0]
    assert x.shape[1] == 2

    params = jnp.stack([
        jnp.float32(x0),
        jnp.float32(y0),
        jnp.exp(-jnp.float32(logscale)),            # hoisted out of the kernel
        jnp.float32(circulation),
    ])

    # Free reshape of the contiguous [N, 2] buffer: lanes hold x0 y0 x1 y1 ...
    flat = x.astype(jnp.float32).reshape(-1)        # (2N,)
    n_elems = 2 * n

    # Adaptive tile: ~target_steps grid steps (>= 2 so the "parallel" axis can
    # be split across v7x's two TensorCores), 8-sublane quantum, capped at
    # block_rows (1 MiB per buffer per step).
    m_needed = pl.cdiv(n_elems, _LANES)
    tm = min(block_rows, max(8, _round_up(pl.cdiv(m_needed, target_steps), 8)))
    m = _round_up(m_needed, tm)
    total = m * _LANES
    if total != n_elems:
        # Bounded tail padding (< tm rows, i.e. <~1/target_steps of the data).
        # Padded lanes are sliced off below; no reductions, so they are harmless.
        flat = jnp.pad(flat, (0, total - n_elems))
    coords = flat.reshape(m, _LANES)

    block = pl.BlockSpec((tm, _LANES), lambda i: (i, 0))
    out = pl.pallas_call(
        _lamboseen_kernel,
        out_shape=jax.ShapeDtypeStruct((m, _LANES), jnp.float32),
        grid=(m // tm,),
        in_specs=[
            pl.BlockSpec(memory_space=pltpu.SMEM),  # scalar params, whole array
            block,                                  # interleaved coords
        ],
        out_specs=block,                            # interleaved velocities
        # Default double-buffering; pipeline_mode=pl.Buffered(3) only if xprof
        # shows exposed DMA at step boundaries.
        compiler_params=pltpu.CompilerParams(
            dimension_semantics=("parallel",)),
        cost_estimate=pl.CostEstimate(
            flops=16 * total,
            transcendentals=2 * total,
            bytes_accessed=2 * 4 * total),
    )(params, coords)

    flat_out = out.reshape(total)
    if total != n_elems:
        flat_out = flat_out[:n_elems]
    return flat_out.reshape(n, 2)


def _reference(x, x0, y0, logscale, circulation):
    xx = (x[:, 0] - x0) * jnp.exp(-logscale)
    yy = (x[:, 1] - y0) * jnp.exp(-logscale)
    r = jnp.sqrt(xx ** 2 + yy ** 2)
    theta = jnp.arctan2(yy, xx)
    dthetadt = 1.0 / r * (1.0 - jnp.exp(-r ** 2))
    dxdt = -dthetadt * jnp.sin(theta)
    dydt = dthetadt * jnp.cos(theta)
    return circulation * jnp.stack([dxdt, dydt], axis=1)


if __name__ == "__main__":
    key = jax.random.PRNGKey(0)

    # Synthetic nonzero parameters (the PyTorch zero-init would give an
    # all-zero output via circulation == 0).
    x0, y0, logscale, circulation = 0.1, -0.2, 0.3, 1.5

    # Lane-aligned and ragged N (exercises padding + single-block path).
    for N in (256, 300):
        x = jax.random.normal(jax.random.fold_in(key, N), (N, 2),
                              dtype=jnp.float32)
        out = jax.block_until_ready(
            lamboseen_forward(x, x0, y0, logscale, circulation))
        ref = _reference(x, x0, y0, logscale, circulation)
        assert out.shape == (N, 2)
        assert jnp.allclose(out, ref, atol=1e-5, rtol=1e-5), \
            f"mismatch vs reference for N={N}"

    # Larger case exercising a multi-step grid with no padding.  Points are
    # kept away from the vortex core, where both this kernel and the reference
    # are ill-conditioned in f32 (1 - exp(-r^2) cancellation at r -> 0).
    N = 8192
    x = 1.0 + 2.0 * jax.random.uniform(jax.random.fold_in(key, 7), (N, 2),
                                       dtype=jnp.float32)
    out = jax.block_until_ready(
        lamboseen_forward(x, x0, y0, logscale, circulation))
    ref = _reference(x, x0, y0, logscale, circulation)
    assert out.shape == (N, 2)
    assert jnp.allclose(out, ref, atol=1e-5, rtol=1e-5), \
        f"mismatch vs reference for N={N}"

    print("KERNEL_OK")
</pallas_src>

<mosaic_0001>
module attributes {stable_mosaic.version = 11 : i64} {
  func.func @_lamboseen_kernel(%arg0: i32, %arg1: memref<4xf32, #tpu.memory_space<smem>>, %arg2: memref<8x128xf32, #tpu.memory_space<vmem>>, %arg3: memref<8x128xf32, #tpu.memory_space<vmem>>) attributes {dimension_semantics = [#tpu.dimension_semantics<parallel>], iteration_bounds = array<i64: 1>, scalar_prefetch = 0 : i64, scratch_operands = 0 : i64, tpu.core_type = #tpu.core_type<tc>, window_params = [{transform_indices = @transform_0, window_bounds = array<i64: 4>}, {transform_indices = @transform_1, window_bounds = array<i64: 8, 128>}, {transform_indices = @transform_2, window_bounds = array<i64: 8, 128>}]} {
    %c0 = arith.constant 0 : index
    %0 = memref.load %arg1[%c0] : memref<4xf32, #tpu.memory_space<smem>>
    %c1 = arith.constant 1 : index
    %1 = memref.load %arg1[%c1] : memref<4xf32, #tpu.memory_space<smem>>
    %c2 = arith.constant 2 : index
    %2 = memref.load %arg1[%c2] : memref<4xf32, #tpu.memory_space<smem>>
    %c3 = arith.constant 3 : index
    %3 = memref.load %arg1[%c3] : memref<4xf32, #tpu.memory_space<smem>>
    %4 = tpu.iota {dimensions = array<i32: 1>} : vector<1x128xi32>
    %c1_i32 = arith.constant 1 : i32
    %5 = vector.broadcast %c1_i32 : i32 to vector<1x128xi32>
    %6 = arith.andi %4, %5 : vector<1x128xi32>
    %c0_i32 = arith.constant 0 : i32
    %7 = vector.broadcast %c0_i32 : i32 to vector<1x128xi32>
    %8 = arith.cmpi eq, %6, %7 : vector<1x128xi32>
    %9 = vector.broadcast %0 : f32 to vector<1x128xf32>
    %10 = vector.broadcast %1 : f32 to vector<1x128xf32>
    %11 = arith.select %8, %9, %10 : vector<1x128xi1>, vector<1x128xf32>
    %cst = arith.constant 0.000000e+00 : f32
    %12 = arith.subf %cst, %3 : f32
    %13 = vector.broadcast %12 : f32 to vector<1x128xf32>
    %14 = vector.broadcast %3 : f32 to vector<1x128xf32>
    %15 = arith.select %8, %13, %14 : vector<1x128xi1>, vector<1x128xf32>
    %c0_0 = arith.constant 0 : index
    %c0_1 = arith.constant 0 : index
    %16 = vector.load %arg2[%c0_0, %c0_1] : memref<8x128xf32, #tpu.memory_space<vmem>>, vector<8x128xf32>
    %17 = vector.broadcast %11 : vector<1x128xf32> to vector<8x128xf32>
    %18 = arith.subf %16, %17 : vector<8x128xf32>
    %19 = vector.broadcast %2 : f32 to vector<8x128xf32>
    %20 = arith.mulf %18, %19 : vector<8x128xf32>
    %c127_i32 = arith.constant 127 : i32
    %21 = tpu.dynamic_rotate %20 by %c127_i32 dim 1 : vector<8x128xf32>, i32 -> vector<8x128xf32>
    %c1_i32_2 = arith.constant 1 : i32
    %22 = tpu.dynamic_rotate %20 by %c1_i32_2 dim 1 : vector<8x128xf32>, i32 -> vector<8x128xf32>
    %23 = vector.shape_cast %8 : vector<1x128xi1> to vector<1x128xi1>
    %24 = vector.broadcast %23 : vector<1x128xi1> to vector<8x128xi1>
    %25 = arith.select %24, %21, %22 : vector<8x128xi1>, vector<8x128xf32>
    %26 = arith.mulf %20, %20 : vector<8x128xf32>
    %27 = arith.mulf %25, %25 : vector<8x128xf32>
    %28 = arith.addf %26, %27 : vector<8x128xf32>
    %29 = tpu.reciprocal %28 {approx = true} : vector<8x128xf32> -> vector<8x128xf32>
    %30 = arith.mulf %28, %29 : vector<8x128xf32>
    %cst_3 = arith.constant 2.000000e+00 : f32
    %31 = vector.broadcast %cst_3 : f32 to vector<8x128xf32>
    %32 = arith.subf %31, %30 : vector<8x128xf32>
    %33 = arith.mulf %29, %32 : vector<8x128xf32>
    %cst_4 = arith.constant 0.000000e+00 : f32
    %34 = vector.broadcast %cst_4 : f32 to vector<8x128xf32>
    %35 = arith.subf %34, %28 : vector<8x128xf32>
    %36 = math.exp %35 : vector<8x128xf32>
    %cst_5 = arith.constant 1.000000e+00 : f32
    %37 = vector.broadcast %cst_5 : f32 to vector<8x128xf32>
    %38 = arith.subf %37, %36 : vector<8x128xf32>
    %39 = arith.mulf %38, %33 : vector<8x128xf32>
    %40 = vector.broadcast %15 : vector<1x128xf32> to vector<8x128xf32>
    %41 = arith.mulf %40, %39 : vector<8x128xf32>
    %42 = arith.mulf %41, %25 : vector<8x128xf32>
    %c0_6 = arith.constant 0 : index
    %c0_7 = arith.constant 0 : index
    %43 = vector.load %arg3[%c0_6, %c0_7] : memref<8x128xf32, #tpu.memory_space<vmem>>, vector<8x128xf32>
    tpu.vector_store %arg3[%c0_6, %c0_7], %42 {strides = array<i32>} : memref<8x128xf32, #tpu.memory_space<vmem>>, vector<8x128xf32>,
    return
  }
  func.func @transform_0(%arg0: i32) -> i32 {
    %c0_i32 = arith.constant 0 : i32
    %c0_i32_0 = arith.constant 0 : i32
    return %c0_i32 : i32
  }
  func.func @transform_1(%arg0: i32) -> (i32, i32) {
    %c0_i32 = arith.constant 0 : i32
    %c0_i32_0 = arith.constant 0 : i32
    return %arg0, %c0_i32 : i32, i32
  }
  func.func @transform_2(%arg0: i32) -> (i32, i32) {
    %c0_i32 = arith.constant 0 : i32
    %c0_i32_0 = arith.constant 0 : i32
    return %arg0, %c0_i32 : i32, i32
  }
}

</mosaic_0001>

<bundles_post_ra>
// kernel: tpu_custom_call.1
= control target key start
LH: loop header
LB: loop body
LE: loop exit
PB: predicated region body
PF: predicated region fallthrough
CT: control target
= control target key end

     0   :  { %7 = vsyncpa [#allocation5], 0  ;;  %s215_s0 = inlined_call_operand.hbm [shape: f32[4], index: 0, kind: input, shape index: {}]   ;;  %s216_s1 = inlined_call_operand.hbm [shape: f32[8,128], index: 1, kind: input, shape index: {}]   ;;  %s217_s2 = inlined_call_operand.hbm [shape: f32[8,128], index: 2, kind: output, shape index: {}]  }
   0x1   :  { %8 = vsyncpa [#allocation3], 0 }
   0x2   :  { %9 = vsyncpa [#allocation4], 0  ;;  %s15_s11 = sshll.u32 %s215_s0, 4  ;;  %s24_s14 = sshll.u32 %s216_s1, 4  ;;  %s16_s11 = int_to_ptr.hbm [resolvable:$true] %s15_s11  ;;  %s25_s14 = int_to_ptr.hbm [resolvable:$true] %s24_s14 }
   0x3   :  { %s176_s15 = smov [#allocation2]   ;;  %s177_s16 = smov [#allocation6]  }
   0x4   :  { %18 = dma.hbm_to_smem %s16_s11, 16, %s176_s15, [#allocation5]  }
   0x5   :  { %s26_s17 = sshll.u32 %s177_s16, 4  ;;  %s27_s17 = int_to_ptr.vmem [resolvable:$true] %s26_s17 }
   0x6   :  { %29 = dma.hbm_to_vmem [thread:$0]  %s25_s14, 128, %s27_s17, [#allocation3]  }
   0x7   :  { %170 = dma.done.wait [#allocation5], 16  }
   0x8   :  { %171 = vsyncadd [#allocation5], 4294967280 }
   0x9   :  { %172 = dma.done.wait [#allocation3], 128  }
   0xa   :  { %173 = vsyncadd [#allocation3], 4294967168 }
   0xb   :  { %38 = sfence }
   0xc   :  { %s39_s18 = sld [smem:[#allocation2]]  ;;  %v43_v0 = vlaneseq  ;;  %v54_v5 = vld [vmem:[#allocation6] sm:$0xff]  ;;  %s178_s1 = smov 127  }
   0xd   :  { %s98_s0 = sld [smem:[#allocation2 + $0x1]]  ;;  %s179_s20 = smov 1  }
   0xe   :  { %s99_s19 = sld [smem:[#allocation2 + $0x2]]  ;;  %v44_v1 = vand.u32 127, %v43_v0  ;;  %s180_s23 = smov [#allocation7]  }
   0xf   :  { %s100_s21 = sld [smem:[#allocation2 + $0x3]]  ;;  %s85_s24 = sshll.u32 %s180_s23, 4  ;;  %s86_s24 = int_to_ptr.vmem [resolvable:$true] %s85_s24 }
  0x10   :  { %v45_v2 = vand.u32 1, %v44_v1  ;;  %s87_s27 = sshll.u32 %s217_s2, 4  ;;  %s88_s27 = int_to_ptr.hbm [resolvable:$true] %s87_s27 }
  0x12   :  { %vm202_vm0 = vcmp.eq.s32.totalorder %v45_v2, 0  ;;  %v47_v4 = vstv %s39_s18 }
  0x13   :  { %v48_v6 = vstv %s98_s0 }
  0x14   :  { %v49_v7 = vsel %vm202_vm0, %v47_v4, %v48_v6  ;;  %v56_v8 = vstv %s99_s19 }
  0x15   :  { %v55_v9 = vsub.f32 %v54_v5, %v49_v7  ;;  %s50_s22 = ssub.f32 0.0, %s100_s21  ;;  %v52_v23 = vstv %s100_s21 }
  0x17   :  { %v57_v10 = vmul.f32 %v56_v8, %v55_v9  ;;  %v51_v22 = vstv %s50_s22 }
  0x18   :  { %v53_v27 = vsel %vm202_vm0, %v51_v22, %v52_v23 }
  0x19   :  { %58 = vrot.lane.b32.xlu0 %v57_v10, %s178_s1  ;;  %v65_v13 = vmul.f32 %v57_v10, %v57_v10 }
  0x21   :  { %60 = vrot.lane.b32.xlu0 %v57_v10, %s179_s20 }
  0x8b   :  { %v59_v11 = vpop.permute.xlu0 %58 }
  0x93   :  { %v61_v12 = vpop.permute.xlu0 %60 }
  0x94   :  { %v64_v14 = vsel %vm202_vm0, %v59_v11, %v61_v12 }
  0x95   :  { %v66_v15 = vmul.f32 %v64_v14, %v64_v14 }
  0x97   :  { %v67_v16 = vadd.f32 %v66_v15, %v65_v13 }
  0x99   :  { %106 = vrcp.f32 %v67_v16  ;;  %v72_v17 = vsub.f32 0.0, %v67_v16 }
  0x9b   :  { %v73_v18 = vmul.f32 1.442695, %v72_v17 }
  0x9d   :  { %108 = vpow2.f32 %v73_v18 }
  0x9f   :  { %v107_v19 = vpop.eup %106 }
  0xa0   :  { %v69_v20 = vmul.f32 %v107_v19, %v67_v16 }
  0xa2   :  { %v70_v21 = vsub.f32 2.0, %v69_v20 }
  0xa3   :  { %v109_v24 = vpop.eup %108 }
  0xa4   :  { %v71_v25 = vmul.f32 %v107_v19, %v70_v21  ;;  %v75_v26 = vsub.f32 1.0, %v109_v24 }
  0xa6   :  { %v76_v28 = vmul.f32 %v75_v26, %v71_v25 }
  0xa8   :  { %v77_v29 = vmul.f32 %v76_v28, %v53_v27 }
  0xaa   :  { %v78_v30 = vmul.f32 %v77_v29, %v64_v14 }
  0xac   :  { %79 = vst [vmem:[#allocation7] sm:$0xff] %v78_v30 }
  0xad   :  { %90 = dma.vmem_to_hbm [thread:$0]  %s86_s24, 128, %s88_s27, [#allocation4]  }
  0xae   :  { %174 = dma.done.wait [#allocation4], 128  }
  0xaf   :  { %175 = vsyncadd [#allocation4], 4294967168 }
  0xb0   :  { %95 = vsyncpa [#allocation3], 1 }
  0xb1   :  { %96 = vsyncpa [#allocation4], 1 }
  0xb2   :  { %97 = vsyncpa [#allocation5], 1 }

</bundles_post_ra>
